<compile_context>
chip_gen: v5e
topology: v5e:2x2
jax: 0.10.0
libtpu: 0.0.40
codegen_flags: <defaults>
</compile_context>

<pallas_src>
import functools

import jax
import jax.numpy as jnp
from jax.experimental import pallas as pl
from jax.experimental.pallas import tpu as pltpu

EPS = 1e-5


# ----------------------------------------------------------------------------
# Kernel 1: conv matmul (Y^T = W^T @ X^T) + per-tile partial BN statistics.
# ----------------------------------------------------------------------------
def conv_stats_kernel(x_ref, w_ref, y_ref, sum_ref, sq_ref):
    # x_ref:   [Kp, tm]      (im2col^T tile, M on lanes)
    # w_ref:   [Cp, Kp]      (conv weight, Cout on sublanes)
    # y_ref:   [Cp, tm]      (conv output tile, lane-dense store)
    # sum_ref: [1, Cp, 128]  per-tile partial per-channel sums
    # sq_ref:  [1, Cp, 128]  per-tile partial per-channel sums of squares
    y = jnp.dot(w_ref[...], x_ref[...], preferred_element_type=jnp.float32)
    y_ref[...] = y

    cp, tm = y.shape
    s = jnp.zeros((cp, 128), jnp.float32)
    q = jnp.zeros((cp, 128), jnp.float32)
    # Static unroll over 128-lane groups: pure VPU adds on vreg-aligned slices.
    for g in range(tm // 128):
        blk = y[:, g * 128:(g + 1) * 128]
        s = s + blk
        q = q + blk * blk
    sum_ref[0] = s
    sq_ref[0] = q


# ----------------------------------------------------------------------------
# Kernel 2: apply batch-norm (per-channel scale/shift) to the conv output.
# ----------------------------------------------------------------------------
def bn_apply_kernel(y_ref, scale_ref, shift_ref, o_ref):
    # y_ref: [Cp, tm]   scale/shift: [Cp, 128] (lane-replicated)   o_ref: [Cp, tm]
    sc = scale_ref[...][:, 0:1]   # [Cp, 1] -> lane broadcast
    sh = shift_ref[...][:, 0:1]
    o_ref[...] = y_ref[...] * sc + sh


# ----------------------------------------------------------------------------
# Host-side transposed im2col: x [N,C,H,W] -> X_col^T [C*9, N*H*W]
# (row order = cin*9 + kh*3 + kw, matching weight.reshape(Cout, Cin*9)).
# ----------------------------------------------------------------------------
def _im2col_T(x_nchw, kh=3, kw=3):
    n, c, h, w = x_nchw.shape
    xp = jnp.pad(x_nchw, ((0, 0), (0, 0), (1, 1), (1, 1)))
    taps = [xp[:, :, i:i + h, j:j + w] for i in range(kh) for j in range(kw)]
    pat = jnp.stack(taps, axis=2)                    # [N, C, 9, H, W]
    pat = pat.transpose(1, 2, 0, 3, 4)               # [C, 9, N, H, W]
    return pat.reshape(c * kh * kw, n * h * w)       # [K, M]


@functools.partial(jax.jit, static_argnames=("tm",))
def conv_bn_forward(x_nchw, weight, bias, gamma, beta, tm=512):
    """x_nchw: [N,3,H,W]; weight: [Cout,Cin,3,3]; bias/gamma/beta: [Cout]."""
    del bias  # cancels exactly: BN subtracts the batch mean (mean shifts by b).
    n, cin, h, w = x_nchw.shape
    cout = weight.shape[0]
    k = cin * 9

    kp = 32      # contraction dim padded to a multiple of 8 sublanes
    cp = 8       # output channels padded only to 8 sublanes
    m = n * h * w
    assert tm % 128 == 0
    t = pl.cdiv(m, tm)
    m_pad = t * tm

    x_colT = _im2col_T(x_nchw).astype(jnp.float32)                     # [K, M]
    x_colT = jnp.pad(x_colT, ((0, kp - k), (0, m_pad - m)))            # [Kp, Mp]

    w_t = weight.reshape(cout, k).astype(jnp.float32)                  # [Cout, K]
    w_t = jnp.pad(w_t, ((0, cp - cout), (0, kp - k)))                  # [Cp, Kp]

    # -- pass 1: conv + per-tile partial statistics (parallel over tiles) -----
    conv_out, sum_p, sq_p = pl.pallas_call(
        conv_stats_kernel,
        out_shape=(
            jax.ShapeDtypeStruct((cp, m_pad), jnp.float32),
            jax.ShapeDtypeStruct((t, cp, 128), jnp.float32),
            jax.ShapeDtypeStruct((t, cp, 128), jnp.float32),
        ),
        grid_spec=pltpu.PrefetchScalarGridSpec(
            num_scalar_prefetch=0,
            grid=(t,),
            in_specs=[
                pl.BlockSpec((kp, tm), lambda j: (0, j)),
                pl.BlockSpec((cp, kp), lambda j: (0, 0)),
            ],
            out_specs=[
                pl.BlockSpec((cp, tm), lambda j: (0, j)),
                pl.BlockSpec((1, cp, 128), lambda j: (j, 0, 0)),
                pl.BlockSpec((1, cp, 128), lambda j: (j, 0, 0)),
            ],
        ),
        compiler_params=pltpu.CompilerParams(
            dimension_semantics=("parallel",)),
    )(x_colT, w_t)

    # -- tiny global-stat combine (O(Cp) work in XLA) -------------------------
    s = jnp.sum(sum_p, axis=(0, 2))                      # [Cp]
    q = jnp.sum(sq_p, axis=(0, 2))                       # [Cp]
    mean = s / m
    var = jnp.maximum(q / m - mean * mean, 0.0)          # padded M cols are 0
    inv_std = jax.lax.rsqrt(var + jnp.float32(EPS))
    gamma_p = jnp.pad(gamma.astype(jnp.float32), (0, cp - cout))
    beta_p = jnp.pad(beta.astype(jnp.float32), (0, cp - cout))
    scale = gamma_p * inv_std                            # 0 on padded channels
    shift = beta_p - mean * scale
    scale_l = jnp.broadcast_to(scale[:, None], (cp, 128))
    shift_l = jnp.broadcast_to(shift[:, None], (cp, 128))

    # -- pass 2: normalize (parallel over tiles, lane-dense stores) -----------
    out_t = pl.pallas_call(
        bn_apply_kernel,
        out_shape=jax.ShapeDtypeStruct((cp, m_pad), jnp.float32),
        grid_spec=pltpu.PrefetchScalarGridSpec(
            num_scalar_prefetch=0,
            grid=(t,),
            in_specs=[
                pl.BlockSpec((cp, tm), lambda j: (0, j)),
                pl.BlockSpec((cp, 128), lambda j: (0, 0)),
                pl.BlockSpec((cp, 128), lambda j: (0, 0)),
            ],
            out_specs=pl.BlockSpec((cp, tm), lambda j: (0, j)),
        ),
        compiler_params=pltpu.CompilerParams(
            dimension_semantics=("parallel",)),
    )(conv_out, scale_l, shift_l)

    # Small-slab post-processing: [Cout, M] -> NCHW.
    out = out_t[:cout, :m].reshape(cout, n, h, w).transpose(1, 0, 2, 3)
    return out


if __name__ == "__main__":
    key = jax.random.PRNGKey(0)
    k_x, k_w, k_b = jax.random.split(key, 3)

    # Small shapes consistent with the module (Cin = Cout = 3, 3x3 kernel).
    N, C, H, W = 2, 3, 16, 16
    x = jax.random.normal(k_x, (N, C, H, W), dtype=jnp.float32)

    fan_in = C * 9
    bound = 1.0 / (fan_in ** 0.5)
    weight = jax.random.uniform(k_w, (3, C, 3, 3), minval=-bound, maxval=bound,
                                dtype=jnp.float32)
    bias = jax.random.uniform(k_b, (3,), minval=-bound, maxval=bound,
                              dtype=jnp.float32)
    gamma = jnp.ones((3,), jnp.float32)
    beta = jnp.zeros((3,), jnp.float32)

    # tm=256 with M=512 exercises multi-tile pipelining.
    out = conv_bn_forward(x, weight, bias, gamma, beta, tm=256)
    jax.block_until_ready(out)
    assert out.shape == (N, 3, H, W)

    # Pure-JAX reference: Conv2d(+bias) followed by training-mode BatchNorm2d.
    y = jax.lax.conv_general_dilated(
        x, weight, window_strides=(1, 1), padding=((1, 1), (1, 1)),
        dimension_numbers=("NCHW", "OIHW", "NCHW"))
    y = y + bias[None, :, None, None]
    mu = jnp.mean(y, axis=(0, 2, 3), keepdims=True)
    var = jnp.mean((y - mu) ** 2, axis=(0, 2, 3), keepdims=True)
    ref = (gamma[None, :, None, None] * (y - mu) * jax.lax.rsqrt(var + EPS)
           + beta[None, :, None, None])

    err = float(jnp.max(jnp.abs(out - ref)))
    assert err < 1e-2, f"max abs err vs reference: {err}"
    print("KERNEL_OK")
</pallas_src>

<mosaic_0001>
module attributes {stable_mosaic.version = 11 : i64} {
  func.func @conv_stats_kernel(%arg0: i32, %arg1: memref<32x256xf32, #tpu.memory_space<vmem>>, %arg2: memref<8x32xf32, #tpu.memory_space<vmem>>, %arg3: memref<8x256xf32, #tpu.memory_space<vmem>>, %arg4: memref<1x8x128xf32, #tpu.memory_space<vmem>>, %arg5: memref<1x8x128xf32, #tpu.memory_space<vmem>>) attributes {dimension_semantics = [#tpu.dimension_semantics<parallel>], iteration_bounds = array<i64: 2>, scalar_prefetch = 0 : i64, scratch_operands = 0 : i64, tpu.core_type = #tpu.core_type<tc>, window_params = [{transform_indices = @transform_0, window_bounds = array<i64: 32, 256>}, {pipeline_mode = #tpu.pipeline_mode<synchronous>, transform_indices = @transform_1, window_bounds = array<i64: 8, 32>}, {transform_indices = @transform_2, window_bounds = array<i64: 8, 256>}, {transform_indices = @transform_3, window_bounds = array<i64: 1, 8, 128>}, {transform_indices = @transform_4, window_bounds = array<i64: 1, 8, 128>}]} {
    %c0 = arith.constant 0 : index
    %c0_0 = arith.constant 0 : index
    %0 = vector.load %arg2[%c0, %c0_0] : memref<8x32xf32, #tpu.memory_space<vmem>>, vector<8x32xf32>
    %c0_1 = arith.constant 0 : index
    %c0_2 = arith.constant 0 : index
    %1 = vector.load %arg1[%c0_1, %c0_2] : memref<32x256xf32, #tpu.memory_space<vmem>>, vector<32x256xf32>
    %cst = arith.constant dense<0.000000e+00> : vector<8x256xf32>
    %2 = tpu.matmul %0, %1, %cst {dimension_numbers = #tpu.dot_dimension_numbers<[1], [0], [0], [1], [0, 0, 1, 1], [], []>} : vector<8x32xf32>, vector<32x256xf32>, vector<8x256xf32> -> vector<8x256xf32>
    %c0_3 = arith.constant 0 : index
    %c0_4 = arith.constant 0 : index
    %3 = vector.load %arg3[%c0_3, %c0_4] : memref<8x256xf32, #tpu.memory_space<vmem>>, vector<8x256xf32>
    tpu.vector_store %arg3[%c0_3, %c0_4], %2 {strides = array<i32>} : memref<8x256xf32, #tpu.memory_space<vmem>>, vector<8x256xf32>,
    %cst_5 = arith.constant 0.000000e+00 : f32
    %4 = vector.broadcast %cst_5 : f32 to vector<8x128xf32>
    %cst_6 = arith.constant 0.000000e+00 : f32
    %5 = vector.broadcast %cst_6 : f32 to vector<8x128xf32>
    %6 = vector.extract_strided_slice %2 {offsets = [0, 0], sizes = [8, 128], strides = [1, 1]} : vector<8x256xf32> to vector<8x128xf32>
    %7 = arith.addf %4, %6 : vector<8x128xf32>
    %8 = arith.mulf %6, %6 : vector<8x128xf32>
    %9 = arith.addf %5, %8 : vector<8x128xf32>
    %10 = vector.extract_strided_slice %2 {offsets = [0, 128], sizes = [8, 128], strides = [1, 1]} : vector<8x256xf32> to vector<8x128xf32>
    %11 = arith.addf %7, %10 : vector<8x128xf32>
    %12 = arith.mulf %10, %10 : vector<8x128xf32>
    %13 = arith.addf %9, %12 : vector<8x128xf32>
    %c0_7 = arith.constant 0 : index
    %c0_8 = arith.constant 0 : index
    %c0_9 = arith.constant 0 : index
    %14 = vector.load %arg4[%c0_7, %c0_8, %c0_9] : memref<1x8x128xf32, #tpu.memory_space<vmem>>, vector<1x8x128xf32>
    %15 = vector.shape_cast %14 : vector<1x8x128xf32> to vector<8x128xf32>
    %16 = vector.shape_cast %11 : vector<8x128xf32> to vector<1x8x128xf32>
    tpu.vector_store %arg4[%c0_7, %c0_8, %c0_9], %16 {strides = array<i32>} : memref<1x8x128xf32, #tpu.memory_space<vmem>>, vector<1x8x128xf32>,
    %c0_10 = arith.constant 0 : index
    %c0_11 = arith.constant 0 : index
    %c0_12 = arith.constant 0 : index
    %17 = vector.load %arg5[%c0_10, %c0_11, %c0_12] : memref<1x8x128xf32, #tpu.memory_space<vmem>>, vector<1x8x128xf32>
    %18 = vector.shape_cast %17 : vector<1x8x128xf32> to vector<8x128xf32>
    %19 = vector.shape_cast %13 : vector<8x128xf32> to vector<1x8x128xf32>
    tpu.vector_store %arg5[%c0_10, %c0_11, %c0_12], %19 {strides = array<i32>} : memref<1x8x128xf32, #tpu.memory_space<vmem>>, vector<1x8x128xf32>,
    return
  }
  func.func @transform_0(%arg0: i32) -> (i32, i32) {
    %c0_i32 = arith.constant 0 : i32
    %c0_i32_0 = arith.constant 0 : i32
    return %c0_i32, %arg0 : i32, i32
  }
  func.func @transform_1(%arg0: i32) -> (i32, i32) {
    %c0_i32 = arith.constant 0 : i32
    %c0_i32_0 = arith.constant 0 : i32
    %c0_i32_1 = arith.constant 0 : i32
    return %c0_i32, %c0_i32_0 : i32, i32
  }
  func.func @transform_2(%arg0: i32) -> (i32, i32) {
    %c0_i32 = arith.constant 0 : i32
    %c0_i32_0 = arith.constant 0 : i32
    return %c0_i32, %arg0 : i32, i32
  }
  func.func @transform_3(%arg0: i32) -> (i32, i32, i32) {
    %c0_i32 = arith.constant 0 : i32
    %c0_i32_0 = arith.constant 0 : i32
    %c0_i32_1 = arith.constant 0 : i32
    return %arg0, %c0_i32, %c0_i32_0 : i32, i32, i32
  }
  func.func @transform_4(%arg0: i32) -> (i32, i32, i32) {
    %c0_i32 = arith.constant 0 : i32
    %c0_i32_0 = arith.constant 0 : i32
    %c0_i32_1 = arith.constant 0 : i32
    return %arg0, %c0_i32, %c0_i32_0 : i32, i32, i32
  }
}

module attributes {stable_mosaic.version = 11 : i64} {
  func.func @bn_apply_kernel(%arg0: i32, %arg1: memref<8x256xf32, #tpu.memory_space<vmem>>, %arg2: memref<8x128xf32, #tpu.memory_space<vmem>>, %arg3: memref<8x128xf32, #tpu.memory_space<vmem>>, %arg4: memref<8x256xf32, #tpu.memory_space<vmem>>) attributes {dimension_semantics = [#tpu.dimension_semantics<parallel>], iteration_bounds = array<i64: 2>, scalar_prefetch = 0 : i64, scratch_operands = 0 : i64, tpu.core_type = #tpu.core_type<tc>, window_params = [{transform_indices = @transform_0, window_bounds = array<i64: 8, 256>}, {pipeline_mode = #tpu.pipeline_mode<synchronous>, transform_indices = @transform_1, window_bounds = array<i64: 8, 128>}, {pipeline_mode = #tpu.pipeline_mode<synchronous>, transform_indices = @transform_2, window_bounds = array<i64: 8, 128>}, {transform_indices = @transform_3, window_bounds = array<i64: 8, 256>}]} {
    %c0 = arith.constant 0 : index
    %c0_0 = arith.constant 0 : index
    %0 = vector.load %arg2[%c0, %c0_0] : memref<8x128xf32, #tpu.memory_space<vmem>>, vector<8x128xf32>
    %1 = vector.extract_strided_slice %0 {offsets = [0, 0], sizes = [8, 1], strides = [1, 1]} : vector<8x128xf32> to vector<8x1xf32>
    %c0_1 = arith.constant 0 : index
    %c0_2 = arith.constant 0 : index
    %2 = vector.load %arg3[%c0_1, %c0_2] : memref<8x128xf32, #tpu.memory_space<vmem>>, vector<8x128xf32>
    %3 = vector.extract_strided_slice %2 {offsets = [0, 0], sizes = [8, 1], strides = [1, 1]} : vector<8x128xf32> to vector<8x1xf32>
    %c0_3 = arith.constant 0 : index
    %c0_4 = arith.constant 0 : index
    %4 = vector.load %arg1[%c0_3, %c0_4] : memref<8x256xf32, #tpu.memory_space<vmem>>, vector<8x256xf32>
    %5 = vector.broadcast %1 : vector<8x1xf32> to vector<8x256xf32>
    %6 = arith.mulf %4, %5 : vector<8x256xf32>
    %7 = vector.broadcast %3 : vector<8x1xf32> to vector<8x256xf32>
    %8 = arith.addf %6, %7 : vector<8x256xf32>
    %c0_5 = arith.constant 0 : index
    %c0_6 = arith.constant 0 : index
    %9 = vector.load %arg4[%c0_5, %c0_6] : memref<8x256xf32, #tpu.memory_space<vmem>>, vector<8x256xf32>
    tpu.vector_store %arg4[%c0_5, %c0_6], %8 {strides = array<i32>} : memref<8x256xf32, #tpu.memory_space<vmem>>, vector<8x256xf32>,
    return
  }
  func.func @transform_0(%arg0: i32) -> (i32, i32) {
    %c0_i32 = arith.constant 0 : i32
    %c0_i32_0 = arith.constant 0 : i32
    return %c0_i32, %arg0 : i32, i32
  }
  func.func @transform_1(%arg0: i32) -> (i32, i32) {
    %c0_i32 = arith.constant 0 : i32
    %c0_i32_0 = arith.constant 0 : i32
    %c0_i32_1 = arith.constant 0 : i32
    return %c0_i32, %c0_i32_0 : i32, i32
  }
  func.func @transform_2(%arg0: i32) -> (i32, i32) {
    %c0_i32 = arith.constant 0 : i32
    %c0_i32_0 = arith.constant 0 : i32
    %c0_i32_1 = arith.constant 0 : i32
    return %c0_i32, %c0_i32_0 : i32, i32
  }
  func.func @transform_3(%arg0: i32) -> (i32, i32) {
    %c0_i32 = arith.constant 0 : i32
    %c0_i32_0 = arith.constant 0 : i32
    return %c0_i32, %arg0 : i32, i32
  }
}

</mosaic_0001>

<bundles_post_ra>
// kernel: conv_bn_forward.2
= control target key start
LH: loop header
LB: loop body
LE: loop exit
PB: predicated region body
PF: predicated region fallthrough
CT: control target
= control target key end

     0   :  { %s533_s15 = smov 0   ;;  %s535_s16 = smov 0   ;;  %s597_s0 = inlined_call_operand.vmem [shape: f32[32,512], index: 0, kind: input, shape index: {}]   ;;  %s598_s1 = inlined_call_operand.vmem [shape: f32[8,32], index: 1, kind: input, shape index: {}]   ;;  %s599_s2 = inlined_call_operand.vmem [shape: f32[8,512], index: 2, kind: output, shape index: {0}]   ;;  %s600_s3 = inlined_call_operand.vmem [shape: f32[2,8,128], index: 3, kind: output, shape index: {1}]   ;;  %s601_s4 = inlined_call_operand.vmem [shape: f32[2,8,128], index: 4, kind: output, shape index: {2}]  }
   0x1   :  { %s537_s17 = smov 0  }
   0x2 LB: > { %s549_s18 = sadd.s32 4294967295, %s506_s17   ;;  %s552_s19 = sadd.s32 1, %s506_s17   ;;  %s506_s17 = sphi %s537_s17, %s604_s17   ;;  %s502_s16 = sphi %s535_s16, %s603_s16   ;;  %s498_s15 = sphi %s533_s15, %s602_s15  }
   0x3   : > { %s19_s20 = ssub.s32 %s506_s17, %s552_s19  ;;  %s22_s21 = sadd.s32 1, %s502_s16 }
   0x4   : > { %p20_p0 = scmp.eq.s32.totalorder %s19_s20, 0  ;;  %p29_p1 = scmp.ne.s32.totalorder %s502_s16, %s498_s15 }
   0x5   : > { %p30_p2 = scmp.eq.s32.totalorder %s506_s17, 0  ;;  %p445_p4 = scmp.ge.s32.totalorder %s506_s17, 2 }
   0x6   : > { %s561_s22 = scalar_select %p20_p0, %s502_s16, %s22_s21  }
   0x7   : > { %p31_p3 = por %p30_p2, %p29_p1  ;;  %157 = sbr.rel (%p445_p4) target bundleno = 24 (0x18), region = 20 }
   0xc   : > { %160 = sbr.rel (!%p31_p3) target bundleno = 24 (0x18), region = 24  ;;  %s162_s23 = sand.u32 (%p31_p3), 1, %s502_s16  }
   0xd   : > { %s459_s24 = sshll.u32 (%p31_p3), %s506_s17, 4  ;;  %s446_s25 = sshll.u32 (%p31_p3), %s162_s23, 6 }
   0xe   : > { %s167_s28 = scalar_lea.vmem (%p31_p3), %s597_s0, %s459_s24  ;;  %s164_s29 = scalar_lea.vmem (%p31_p3), [#allocation2], %s446_s25 }
   0xf   : > { %v180_v0 = vld [vmem:[%s167_s28] sm:$0xff] (%p31_p3)  ;;  %v182_v1 = vld [vmem:[%s167_s28 + $0x8] sm:$0xff] (%p31_p3) }
  0x10   : > { %v184_v2 = vld [vmem:[%s167_s28 + $0x20] sm:$0xff] (%p31_p3)  ;;  %181 = vst [vmem:[%s164_s29] sm:$0xff] (%p31_p3), %v180_v0  ;;  %v186_v3 = vld [vmem:[%s167_s28 + $0x28] sm:$0xff] (%p31_p3) }
  0x11   : > { %183 = vst [vmem:[%s164_s29 + $0x8] sm:$0xff] %v182_v1  ;;  %v188_v4 = vld [vmem:[%s167_s28 + $0x40] sm:$0xff]  ;;  %v190_v5 = vld [vmem:[%s167_s28 + $0x48] sm:$0xff] }
  0x12   : > { %185 = vst [vmem:[%s164_s29 + $0x10] sm:$0xff] %v184_v2  ;;  %v192_v6 = vld [vmem:[%s167_s28 + $0x60] sm:$0xff]  ;;  %v194_v7 = vld [vmem:[%s167_s28 + $0x68] sm:$0xff] }
  0x13   : > { %187 = vst [vmem:[%s164_s29 + $0x18] sm:$0xff] %v186_v3 }
  0x14   : > { %189 = vst [vmem:[%s164_s29 + $0x20] sm:$0xff] %v188_v4 }
  0x15   : > { %191 = vst [vmem:[%s164_s29 + $0x28] sm:$0xff] %v190_v5 }
  0x16   : > { %193 = vst [vmem:[%s164_s29 + $0x30] sm:$0xff] %v192_v6 }
  0x17   : > { %195 = vst [vmem:[%s164_s29 + $0x38] sm:$0xff] %v194_v7 }
  0x18 PF: > { %p449_p5 = scmp.ge.s32.totalorder %s506_s17, 1  ;;  %p200_p6 = scmp.lt.s32.totalorder %s506_s17, 3 }
  0x1a   : > { %p201_p7 = pnand %p449_p5, %p200_p6 }
  0x1b   : > { %s207_s30 = sand.u32 (!%p201_p7), 1, %s498_s15   ;;  %s451_s9 = sshll.u32 (!%p201_p7), %s549_s18, 1 }
  0x1c   : > { %204 = sbr.rel (%p201_p7) target bundleno = 172 (0xac), region = 47  ;;  %s450_s5 = sshll.u32 (!%p201_p7), %s207_s30, 6 }
  0x1d   : > { %s209_s6 = scalar_lea.vmem (!%p201_p7), [#allocation2], %s450_s5  ;;  %p242_p8 = scmp.lt.s32.totalorder (!%p201_p7), %s451_s9, 3 }
  0x1e   : > { %p247_p9 = scmp.lt.s32.totalorder (!%p201_p7), %s549_s18, 1 }
  0x21   : > { %v262_v8 = vld [vmem:[%s209_s6 + $0x30] sm:$0xff]  ;;  %v263_v9 = vld [vmem:[%s209_s6 + $0x38] sm:$0xff]  ;;  %v260_v10 = vld [vmem:[%s209_s6 + $0x20] sm:$0xff]  ;;  %vm264_vm0 = vcmask 261120   ;;  %s606_s9 = smov (!%p242_p8, %s451_s9), 3  ;;  %s608_s18 = smov (!%p247_p9, %s549_s18), 1 }
  0x22   : > { %280 = vmatpush.msra.mxu0 %v262_v8  ;;  %300 = vmatpush.msra.mxu1 %v263_v9  ;;  %v261_v11 = vld [vmem:[%s209_s6 + $0x28] sm:$0xff]  ;;  %v258_v12 = vld [vmem:[%s209_s6 + $0x10] sm:$0xff]  ;;  %v259_v13 = vld [vmem:[%s209_s6 + $0x18] sm:$0xff]  ;;  %s452_s10 = sshll.u32 %s606_s9, 3  ;;  %s453_s11 = sshll.u32 %s608_s18, 3 }
  0x23   : > { %v256_v14 = vld [vmem:[%s209_s6] sm:$0xff]  ;;  %v257_v15 = vld [vmem:[%s209_s6 + $0x8] sm:$0xff]  ;;  %s245_s14 = scalar_lea.vmem %s599_s2, %s452_s10  ;;  %s250_s20 = scalar_lea.vmem %s600_s3, %s453_s11 }
  0x24   : > { %281 = vmatpush.msra.mxu0 %v260_v10  ;;  %301 = vmatpush.msra.mxu1 %v261_v11  ;;  %v255_v16 = vld [vmem:[%s598_s1] sm:$0xff]  ;;  %s254_s24 = scalar_lea.vmem %s601_s4, %s453_s11 }
  0x26   : > { %282 = vmatpush.msra.mxu0 %v258_v12  ;;  %302 = vmatpush.msra.mxu1 %v259_v13 }
  0x28   : > { %283 = vmatpush.msra.mxu0 %v256_v14  ;;  %303 = vmatpush.msra.mxu1 %v257_v15 }
  0x29   : > { %455 = vmatmul.msk.f32.vlgmr.msra.gmra.mxu0 %vm264_vm0, %v255_v16  ;;  %456 = vmatmul.msk.f32.vlgmr.msra.gmra.mxu1 %vm264_vm0, %v255_v16 }
  0xa6   : > { %v285_v17 = vpop.f32.mrf.mxu0  ;;  %v305_v18 = vpop.f32.mrf.mxu1 }
  0xa7   : > { %308 = vst [vmem:[%s245_s14] sm:$0xff] %v285_v17  ;;  %v311_v19 = vmul.f32 %v285_v17, %v285_v17  ;;  %v313_v20 = vadd.f32 %v305_v18, %v285_v17  ;;  %v314_v21 = vmul.f32 %v305_v18, %v305_v18 }
  0xa8   : > { %309 = vst [vmem:[%s245_s14 + $0x8] sm:$0xff] %v305_v18 }
  0xa9   : > { %v315_v22 = vadd.f32 %v314_v21, %v311_v19  ;;  %316 = vst [vmem:[%s250_s20] sm:$0xff] %v313_v20 }
  0xab   : > { %317 = vst [vmem:[%s254_s24] sm:$0xff] %v315_v22 }
  0xac PF: > { %p12_p10 = scmp.ge.s32.totalorder %s552_s19, 4   ;;  %s602_s15 = smov %s502_s16 }
  0xad   : > { %s603_s16 = smov %s561_s22  ;;  %s604_s17 = smov %s552_s19 }
  0xae   :  { %14 = sbr.rel (!%p12_p10) target bundleno = 2 (0x2), region = 110 }

// kernel: conv_bn_forward.3
= control target key start
LH: loop header
LB: loop body
LE: loop exit
PB: predicated region body
PF: predicated region fallthrough
CT: control target
= control target key end

     0   :  { %s300_s12 = smov 0   ;;  %s323_s0 = inlined_call_operand.vmem [shape: f32[8,512], index: 0, kind: input, shape index: {}]   ;;  %s324_s1 = inlined_call_operand.vmem [shape: f32[8,128], index: 1, kind: input, shape index: {}]   ;;  %s325_s2 = inlined_call_operand.vmem [shape: f32[8,128], index: 2, kind: input, shape index: {}]   ;;  %s326_s3 = inlined_call_operand.vmem [shape: f32[8,512], index: 3, kind: output, shape index: {}]  }
   0x1 LB: > { %s250_s13 = sadd.s32 4294967295, %s277_s12   ;;  %p254_p0 = scmp.ge.s32.totalorder %s277_s12, 1  ;;  %s277_s12 = sphi %s300_s12, %s13_s12  }
   0x2   : > { %p138_p1 = scmp.lt.s32.totalorder %s277_s12, 3 }
   0x4   : > { %p139_p2 = pnand %p254_p0, %p138_p1 }
   0x5   : > { %s255_s18 = sshll.u32 (!%p139_p2), %s250_s13, 1 }
   0x6   : > { %142 = sbr.rel (%p139_p2) target bundleno = 140 (0x8c), region = 32  ;;  %p163_p3 = scmp.lt.s32.totalorder (!%p139_p2), %s255_s18, 3 }
   0xb   : > { %v174_v0 = vld [vmem:[%s324_s1] sm:$0xff]  ;;  %v279_v1 = vmov 0   ;;  %s328_s18 = smov (!%p163_p3, %s255_s18), 3 }
   0xc   : > { %270 = vset.pattern.permute.xlu0 %v279_v1  ;;  %v175_v2 = vld [vmem:[%s325_s2] sm:$0xff]  ;;  %s256_s19 = sshll.u32 %s328_s18, 3 }
   0xd   : > { %180 = vperm.xlu0 %270, %v174_v0   ;;  %s166_s22 = scalar_lea.vmem %s323_s0, %s256_s19  ;;  %s172_s25 = scalar_lea.vmem %s326_s3, %s256_s19 }
   0xe   : > { %v176_v4 = vld [vmem:[%s166_s22] sm:$0xff]  ;;  %v177_v5 = vld [vmem:[%s166_s22 + $0x8] sm:$0xff] }
  0x15   : > { %187 = vperm.xlu0 %270, %v175_v2  }
  0x7f   : > { %v181_v3 = vpop.permute.xlu0 %180 }
  0x80   : > { %v183_v6 = vmul.f32 %v181_v3, %v176_v4  ;;  %v184_v7 = vmul.f32 %v181_v3, %v177_v5 }
  0x87   : > { %v188_v8 = vpop.permute.xlu0 %187 }
  0x88   : > { %v190_v9 = vadd.f32 %v188_v8, %v183_v6  ;;  %v191_v10 = vadd.f32 %v188_v8, %v184_v7 }
  0x8a   : > { %192 = vst [vmem:[%s172_s25] sm:$0xff] %v190_v9 }
  0x8b   : > { %193 = vst [vmem:[%s172_s25 + $0x8] sm:$0xff] %v191_v10 }
  0x8c PF: > { %s13_s12 = sadd.s32 1, %s277_s12  }
  0x8d   : > { %p10_p4 = scmp.ge.s32.totalorder %s13_s12, 4  }
  0x8f   :  { %12 = sbr.rel (!%p10_p4) target bundleno = 1 (0x1), region = 62 }

</bundles_post_ra>
